<compile_context>
chip_gen: v6e
topology: v6e:2x2x1
jax: 0.10.0
libtpu: 0.0.40
codegen_flags: <defaults>
</compile_context>

<pallas_src>
import math
import functools

import jax
import jax.numpy as jnp
from jax.experimental import pallas as pl
from jax.experimental.pallas import tpu as pltpu


def _mha_kernel(q_ref, k_ref, v_ref, wq_ref, wk_ref, wv_ref, wo_ref, o_ref,
                kp_ref, vp_ref, *, head_num, d_head, approx_recip):
    cd = kp_ref.dtype
    scale = 1.0 / math.sqrt(d_head)

    # Project K and V once per batch element: the qi axis is "arbitrary" (sequential),
    # and the K/V input blocks only change with the batch index, so the projected K/V
    # stay valid in VMEM scratch for every query tile of this batch element.
    @pl.when(pl.program_id(1) == 0)
    def _():
        kp_ref[...] = jnp.dot(k_ref[0], wk_ref[...],
                              preferred_element_type=jnp.float32).astype(cd)
        vp_ref[...] = jnp.dot(v_ref[0], wv_ref[...],
                              preferred_element_type=jnp.float32).astype(cd)

    # Query projection for this (batch, query-tile) block.  Weights arrive
    # pre-transposed to (in, out) layout, so y = x @ W^T is just x @ w.
    qp = jnp.dot(q_ref[0], wq_ref[...],
                 preferred_element_type=jnp.float32).astype(cd)        # (Tq, D)
    kp = kp_ref[...]                                                   # (S,  D)
    vp = vp_ref[...]                                                   # (S,  D)

    # Per-head scaled QK^T (static unrolled loop).  Head h is the contiguous
    # d_head-wide column chunk, exactly what torch.tensor_split(dim=2) produces.
    logits = [
        jnp.einsum('qd,kd->qk',
                   qp[:, h * d_head:(h + 1) * d_head],
                   kp[:, h * d_head:(h + 1) * d_head],
                   preferred_element_type=jnp.float32) * scale
        for h in range(head_num)
    ]

    # nn.Softmax(dim=1) on the (B, H, S, S) scores: normalization across the *head*
    # axis (elementwise per (q, k) position), done with a running max / running sum.
    m = logits[0]
    for h in range(1, head_num):
        m = jnp.maximum(m, logits[h])
    e = [jnp.exp(l - m) for l in logits]
    denom = e[0]
    for h in range(1, head_num):
        denom = denom + e[h]
    inv = pl.reciprocal(denom, approx=approx_recip)   # EUP slot when approx=True
    # TODO(synk): nn.Dropout(0.1) is identity in eval mode; not applied here.
    # TODO(synk): optional additive attention mask of the PyTorch signature not supported.

    # PV, concat_head and the output projection fused:
    #   out = sum_h (softmax_h @ V_h) @ Wo^T[h*dh:(h+1)*dh, :]
    acc = None
    for h in range(head_num):
        p_h = (e[h] * inv).astype(cd)                                  # (Tq, S)
        z_h = jnp.dot(p_h, vp[:, h * d_head:(h + 1) * d_head],
                      preferred_element_type=jnp.float32)              # (Tq, dh)
        term = jnp.dot(z_h.astype(cd), wo_ref[h * d_head:(h + 1) * d_head, :],
                       preferred_element_type=jnp.float32)             # (Tq, D)
        acc = term if acc is None else acc + term
    o_ref[0] = acc.astype(o_ref.dtype)


def _vmem_limit_bytes():
    """~3/4 of physical per-core VMEM (≈48 MiB on v7x, ≈96 MiB on v5e/v6e)."""
    try:
        cap = int(pltpu.get_tpu_info().vmem_capacity_bytes)
    except Exception:
        cap = 64 * 1024 * 1024          # conservative fallback: v7x per-TC VMEM
    return cap * 3 // 4


def _default_q_block(S, head_num, vmem_limit):
    """Largest query tile (<= 256 rows, multiple of 16, divisor of S) whose
    (head_num + 2) live f32 (Tq, S) score tiles fit the VMEM score budget."""
    score_budget = min(vmem_limit // 3, 16 * 1024 * 1024)
    per_row = (head_num + 2) * S * 4
    target = min(256, max(16, score_budget // max(per_row, 1)))
    if S <= target:
        return S
    t = (target // 16) * 16
    while t >= 16:
        if S % t == 0:
            return t
        t -= 16
    return S       # no aligned divisor -> single full-length tile


def multi_head_attention(q, k, v, wq, wk, wv, wo, *, head_num=2,
                         q_block=None, compute_dtype=jnp.bfloat16):
    """Q, K, V: (B, S, D); wq/wk/wv/wo: (D, D) in PyTorch (out, in) layout."""
    B, S, D = q.shape
    assert k.shape == (B, S, D) and v.shape == (B, S, D)
    assert D % head_num == 0
    d_head = D // head_num
    out_dtype = q.dtype

    vmem_limit = _vmem_limit_bytes()
    Tq = _default_q_block(S, head_num, vmem_limit) if q_block is None else min(q_block, S)
    assert S % Tq == 0, f"q_block={Tq} must divide S={S}"
    sublane = 16 if jnp.dtype(compute_dtype).itemsize < 4 else 8
    assert Tq == S or Tq % sublane == 0, (
        f"q_block={Tq} must be the full sequence length or a multiple of {sublane}")

    # Pre-cast inputs and pre-transpose ((out, in) -> (in, out)) + pre-cast weights in
    # the wrapper: half-sized DMA / pipeline buffers, zero in-kernel transposes.
    q_c = q.astype(compute_dtype)
    k_c = k.astype(compute_dtype)
    v_c = v.astype(compute_dtype)
    wqT = wq.T.astype(compute_dtype)
    wkT = wk.T.astype(compute_dtype)
    wvT = wv.T.astype(compute_dtype)
    woT = wo.T.astype(compute_dtype)

    approx_recip = jnp.dtype(compute_dtype) != jnp.dtype(jnp.float32)
    kernel = functools.partial(_mha_kernel, head_num=head_num, d_head=d_head,
                               approx_recip=approx_recip)

    grid = (B, S // Tq)                       # batch "parallel", query tiles "arbitrary"
    q_spec = pl.BlockSpec((1, Tq, D), lambda b, qi: (b, qi, 0))
    kv_spec = pl.BlockSpec((1, S, D), lambda b, qi: (b, 0, 0),
                           pipeline_mode=pl.Buffered(1))   # block fixed across qi
    w_spec = pl.BlockSpec((D, D), lambda b, qi: (0, 0),
                          pipeline_mode=pl.Buffered(1))    # block never changes
    o_spec = pl.BlockSpec((1, Tq, D), lambda b, qi: (b, qi, 0))
    # TODO(synk): for D < 128 the output stores are masked (lane-sparse); real ViT dims
    # (multiples of 128) are lane-dense, so no wrapper-side output reshaping is done.

    in_bytes = jnp.dtype(compute_dtype).itemsize
    out_bytes = jnp.dtype(out_dtype).itemsize
    flops = 8 * B * S * D * D + 4 * B * S * S * D            # 4 projections + QK^T + PV
    transcendentals = B * head_num * S * S + B * S * S       # exp + reciprocal
    bytes_accessed = (3 * B * S * D * in_bytes               # Q/K/V (K/V fetched once per b)
                      + B * S * D * out_bytes                # output
                      + 4 * D * D * in_bytes)                # weights (fetched once)

    return pl.pallas_call(
        kernel,
        out_shape=jax.ShapeDtypeStruct((B, S, D), out_dtype),
        grid=grid,
        in_specs=[q_spec, kv_spec, kv_spec, w_spec, w_spec, w_spec, w_spec],
        out_specs=o_spec,
        scratch_shapes=[pltpu.VMEM((S, D), compute_dtype),   # projected K (per batch elem)
                        pltpu.VMEM((S, D), compute_dtype)],  # projected V (per batch elem)
        compiler_params=pltpu.CompilerParams(
            dimension_semantics=("parallel", "arbitrary"),
            vmem_limit_bytes=vmem_limit),
        cost_estimate=pl.CostEstimate(
            flops=flops, transcendentals=transcendentals,
            bytes_accessed=bytes_accessed),
    )(q_c, k_c, v_c, wqT, wkT, wvT, woT)


def _reference(q, k, v, wq, wk, wv, wo, head_num):
    """Pure-JAX f32 replica of the PyTorch forward (eval mode, mask=None)."""
    B, S, D = q.shape
    dh = D // head_num
    qp, kp, vp = q @ wq.T, k @ wk.T, v @ wv.T

    def split(x):  # (B, S, D) -> (B, H, S, dh)
        return jnp.stack(jnp.split(x, head_num, axis=2), axis=1)

    Qh, Kh, Vh = split(qp), split(kp), split(vp)
    qk = jnp.einsum('bhqd,bhkd->bhqk', Qh, Kh) / math.sqrt(dh)
    sm = jax.nn.softmax(qk, axis=1)             # softmax over head axis (dim=1)
    out = jnp.einsum('bhqk,bhkd->bhqd', sm, Vh)
    out = out.transpose(0, 2, 1, 3).reshape(B, S, D)   # concat_head
    return out @ wo.T


if __name__ == "__main__":
    B, S, DIM, H = 2, 8, 32, 2

    key = jax.random.PRNGKey(0)
    kq, kk, kv, k1, k2, k3, k4 = jax.random.split(key, 7)

    q = jax.random.normal(kq, (B, S, DIM), dtype=jnp.float32)
    k = jax.random.normal(kk, (B, S, DIM), dtype=jnp.float32)
    v = jax.random.normal(kv, (B, S, DIM), dtype=jnp.float32)

    # nn.Linear default init: U(-1/sqrt(fan_in), 1/sqrt(fan_in)), shape (out, in).
    bound = 1.0 / math.sqrt(DIM)
    wq = jax.random.uniform(k1, (DIM, DIM), jnp.float32, -bound, bound)
    wk = jax.random.uniform(k2, (DIM, DIM), jnp.float32, -bound, bound)
    wv = jax.random.uniform(k3, (DIM, DIM), jnp.float32, -bound, bound)
    wo = jax.random.uniform(k4, (DIM, DIM), jnp.float32, -bound, bound)

    ref = _reference(q, k, v, wq, wk, wv, wo, H)

    # f32-compute path (exact reciprocal): tight agreement with the reference.
    out_f32 = multi_head_attention(q, k, v, wq, wk, wv, wo, head_num=H,
                                   compute_dtype=jnp.float32)
    out_f32 = jax.block_until_ready(out_f32)
    assert out_f32.shape == (B, S, DIM)
    assert jnp.allclose(out_f32, ref, atol=1e-4, rtol=1e-4), "f32 mismatch vs reference"

    # Default bf16-MXU / f32-accumulation path: ~0.5-1% relative error expected.
    out = multi_head_attention(q, k, v, wq, wk, wv, wo, head_num=H)
    out = jax.block_until_ready(out)
    assert out.shape == (B, S, DIM)
    assert jnp.allclose(out, ref, atol=3e-2, rtol=3e-2), "bf16 mismatch vs reference"

    print("KERNEL_OK")
</pallas_src>

<mosaic_0001>
module attributes {stable_mosaic.version = 11 : i64} {
  func.func @_mha_kernel(%arg0: i32, %arg1: i32, %arg2: memref<1x8x32xf32, #tpu.memory_space<vmem>>, %arg3: memref<1x8x32xf32, #tpu.memory_space<vmem>>, %arg4: memref<1x8x32xf32, #tpu.memory_space<vmem>>, %arg5: memref<32x32xf32, #tpu.memory_space<vmem>>, %arg6: memref<32x32xf32, #tpu.memory_space<vmem>>, %arg7: memref<32x32xf32, #tpu.memory_space<vmem>>, %arg8: memref<32x32xf32, #tpu.memory_space<vmem>>, %arg9: memref<1x8x32xf32, #tpu.memory_space<vmem>>, %arg10: memref<8x32xf32, #tpu.memory_space<vmem>>, %arg11: memref<8x32xf32, #tpu.memory_space<vmem>>) attributes {dimension_semantics = [#tpu.dimension_semantics<parallel>, #tpu.dimension_semantics<arbitrary>], iteration_bounds = array<i64: 2, 1>, scalar_prefetch = 0 : i64, scratch_operands = 2 : i64, tpu.core_type = #tpu.core_type<tc>, window_params = [{transform_indices = @transform_0, window_bounds = array<i64: 1, 8, 32>}, {pipeline_mode = #tpu.pipeline_mode<synchronous>, transform_indices = @transform_1, window_bounds = array<i64: 1, 8, 32>}, {pipeline_mode = #tpu.pipeline_mode<synchronous>, transform_indices = @transform_2, window_bounds = array<i64: 1, 8, 32>}, {pipeline_mode = #tpu.pipeline_mode<synchronous>, transform_indices = @transform_3, window_bounds = array<i64: 32, 32>}, {pipeline_mode = #tpu.pipeline_mode<synchronous>, transform_indices = @transform_4, window_bounds = array<i64: 32, 32>}, {pipeline_mode = #tpu.pipeline_mode<synchronous>, transform_indices = @transform_5, window_bounds = array<i64: 32, 32>}, {pipeline_mode = #tpu.pipeline_mode<synchronous>, transform_indices = @transform_6, window_bounds = array<i64: 32, 32>}, {transform_indices = @transform_7, window_bounds = array<i64: 1, 8, 32>}]} {
    %c0_i32 = arith.constant 0 : i32
    %0 = arith.cmpi eq, %arg1, %c0_i32 : i32
    %1 = arith.extui %0 : i1 to i32
    %c0_i32_0 = arith.constant 0 : i32
    %2 = arith.cmpi ne, %1, %c0_i32_0 : i32
    scf.if %2 {
      %c0_23 = arith.constant 0 : index
      %c0_24 = arith.constant 0 : index
      %c0_25 = arith.constant 0 : index
      %40 = vector.load %arg3[%c0_23, %c0_24, %c0_25] : memref<1x8x32xf32, #tpu.memory_space<vmem>>, vector<1x8x32xf32>
      %41 = vector.shape_cast %40 : vector<1x8x32xf32> to vector<8x32xf32>
      %c0_26 = arith.constant 0 : index
      %c0_27 = arith.constant 0 : index
      %42 = vector.load %arg6[%c0_26, %c0_27] : memref<32x32xf32, #tpu.memory_space<vmem>>, vector<32x32xf32>
      %cst_28 = arith.constant dense<0.000000e+00> : vector<8x32xf32>
      %43 = tpu.matmul %41, %42, %cst_28 {dimension_numbers = #tpu.dot_dimension_numbers<[1], [0], [0], [1], [0, 0, 1, 1], [], []>} : vector<8x32xf32>, vector<32x32xf32>, vector<8x32xf32> -> vector<8x32xf32>
      %c0_29 = arith.constant 0 : index
      %c0_30 = arith.constant 0 : index
      %44 = vector.load %arg10[%c0_29, %c0_30] : memref<8x32xf32, #tpu.memory_space<vmem>>, vector<8x32xf32>
      tpu.vector_store %arg10[%c0_29, %c0_30], %43 {strides = array<i32>} : memref<8x32xf32, #tpu.memory_space<vmem>>, vector<8x32xf32>,
      %c0_31 = arith.constant 0 : index
      %c0_32 = arith.constant 0 : index
      %c0_33 = arith.constant 0 : index
      %45 = vector.load %arg4[%c0_31, %c0_32, %c0_33] : memref<1x8x32xf32, #tpu.memory_space<vmem>>, vector<1x8x32xf32>
      %46 = vector.shape_cast %45 : vector<1x8x32xf32> to vector<8x32xf32>
      %c0_34 = arith.constant 0 : index
      %c0_35 = arith.constant 0 : index
      %47 = vector.load %arg7[%c0_34, %c0_35] : memref<32x32xf32, #tpu.memory_space<vmem>>, vector<32x32xf32>
      %cst_36 = arith.constant dense<0.000000e+00> : vector<8x32xf32>
      %48 = tpu.matmul %46, %47, %cst_36 {dimension_numbers = #tpu.dot_dimension_numbers<[1], [0], [0], [1], [0, 0, 1, 1], [], []>} : vector<8x32xf32>, vector<32x32xf32>, vector<8x32xf32> -> vector<8x32xf32>
      %c0_37 = arith.constant 0 : index
      %c0_38 = arith.constant 0 : index
      %49 = vector.load %arg11[%c0_37, %c0_38] : memref<8x32xf32, #tpu.memory_space<vmem>>, vector<8x32xf32>
      tpu.vector_store %arg11[%c0_37, %c0_38], %48 {strides = array<i32>} : memref<8x32xf32, #tpu.memory_space<vmem>>, vector<8x32xf32>,
    } else {
    }
    %c0 = arith.constant 0 : index
    %c0_1 = arith.constant 0 : index
    %c0_2 = arith.constant 0 : index
    %3 = vector.load %arg2[%c0, %c0_1, %c0_2] : memref<1x8x32xf32, #tpu.memory_space<vmem>>, vector<1x8x32xf32>
    %4 = vector.shape_cast %3 : vector<1x8x32xf32> to vector<8x32xf32>
    %c0_3 = arith.constant 0 : index
    %c0_4 = arith.constant 0 : index
    %5 = vector.load %arg5[%c0_3, %c0_4] : memref<32x32xf32, #tpu.memory_space<vmem>>, vector<32x32xf32>
    %cst = arith.constant dense<0.000000e+00> : vector<8x32xf32>
    %6 = tpu.matmul %4, %5, %cst {dimension_numbers = #tpu.dot_dimension_numbers<[1], [0], [0], [1], [0, 0, 1, 1], [], []>} : vector<8x32xf32>, vector<32x32xf32>, vector<8x32xf32> -> vector<8x32xf32>
    %c0_5 = arith.constant 0 : index
    %c0_6 = arith.constant 0 : index
    %7 = vector.load %arg10[%c0_5, %c0_6] : memref<8x32xf32, #tpu.memory_space<vmem>>, vector<8x32xf32>
    %c0_7 = arith.constant 0 : index
    %c0_8 = arith.constant 0 : index
    %8 = vector.load %arg11[%c0_7, %c0_8] : memref<8x32xf32, #tpu.memory_space<vmem>>, vector<8x32xf32>
    %9 = vector.extract_strided_slice %6 {offsets = [0, 0], sizes = [8, 16], strides = [1, 1]} : vector<8x32xf32> to vector<8x16xf32>
    %10 = vector.extract_strided_slice %7 {offsets = [0, 0], sizes = [8, 16], strides = [1, 1]} : vector<8x32xf32> to vector<8x16xf32>
    "tpu.trace_start"() <{level = 10 : i32, message = "qd,kd->qk"}> : () -> ()
    %cst_9 = arith.constant dense<0.000000e+00> : vector<8x8xf32>
    %11 = tpu.matmul %9, %10, %cst_9 {dimension_numbers = #tpu.dot_dimension_numbers<[1], [1], [0], [0], [0, 0, 1, 0], [], []>} : vector<8x16xf32>, vector<8x16xf32>, vector<8x8xf32> -> vector<8x8xf32>
    "tpu.trace_stop"() : () -> ()
    %cst_10 = arith.constant 2.500000e-01 : f32
    %12 = vector.broadcast %cst_10 : f32 to vector<8x8xf32>
    %13 = arith.mulf %11, %12 : vector<8x8xf32>
    %14 = vector.extract_strided_slice %6 {offsets = [0, 16], sizes = [8, 16], strides = [1, 1]} : vector<8x32xf32> to vector<8x16xf32>
    %15 = vector.extract_strided_slice %7 {offsets = [0, 16], sizes = [8, 16], strides = [1, 1]} : vector<8x32xf32> to vector<8x16xf32>
    "tpu.trace_start"() <{level = 10 : i32, message = "qd,kd->qk"}> : () -> ()
    %cst_11 = arith.constant dense<0.000000e+00> : vector<8x8xf32>
    %16 = tpu.matmul %14, %15, %cst_11 {dimension_numbers = #tpu.dot_dimension_numbers<[1], [1], [0], [0], [0, 0, 1, 0], [], []>} : vector<8x16xf32>, vector<8x16xf32>, vector<8x8xf32> -> vector<8x8xf32>
    "tpu.trace_stop"() : () -> ()
    %cst_12 = arith.constant 2.500000e-01 : f32
    %17 = vector.broadcast %cst_12 : f32 to vector<8x8xf32>
    %18 = arith.mulf %16, %17 : vector<8x8xf32>
    %19 = arith.maximumf %13, %18 : vector<8x8xf32>
    %20 = arith.subf %13, %19 : vector<8x8xf32>
    %21 = math.exp %20 : vector<8x8xf32>
    %22 = arith.subf %18, %19 : vector<8x8xf32>
    %23 = math.exp %22 : vector<8x8xf32>
    %24 = arith.addf %21, %23 : vector<8x8xf32>
    %25 = tpu.reciprocal %24 : vector<8x8xf32> -> vector<8x8xf32>
    %26 = arith.mulf %21, %25 : vector<8x8xf32>
    %27 = vector.extract_strided_slice %8 {offsets = [0, 0], sizes = [8, 16], strides = [1, 1]} : vector<8x32xf32> to vector<8x16xf32>
    %cst_13 = arith.constant dense<0.000000e+00> : vector<8x16xf32>
    %28 = tpu.matmul %26, %27, %cst_13 {dimension_numbers = #tpu.dot_dimension_numbers<[1], [0], [0], [1], [0, 0, 1, 1], [], []>} : vector<8x8xf32>, vector<8x16xf32>, vector<8x16xf32> -> vector<8x16xf32>
    %c0_14 = arith.constant 0 : index
    %c0_15 = arith.constant 0 : index
    %29 = vector.load %arg8[%c0_14, %c0_15] : memref<32x32xf32, #tpu.memory_space<vmem>>, vector<16x32xf32>
    %cst_16 = arith.constant dense<0.000000e+00> : vector<8x32xf32>
    %30 = tpu.matmul %28, %29, %cst_16 {dimension_numbers = #tpu.dot_dimension_numbers<[1], [0], [0], [1], [0, 0, 1, 1], [], []>} : vector<8x16xf32>, vector<16x32xf32>, vector<8x32xf32> -> vector<8x32xf32>
    %31 = arith.mulf %23, %25 : vector<8x8xf32>
    %32 = vector.extract_strided_slice %8 {offsets = [0, 16], sizes = [8, 16], strides = [1, 1]} : vector<8x32xf32> to vector<8x16xf32>
    %cst_17 = arith.constant dense<0.000000e+00> : vector<8x16xf32>
    %33 = tpu.matmul %31, %32, %cst_17 {dimension_numbers = #tpu.dot_dimension_numbers<[1], [0], [0], [1], [0, 0, 1, 1], [], []>} : vector<8x8xf32>, vector<8x16xf32>, vector<8x16xf32> -> vector<8x16xf32>
    %c16 = arith.constant 16 : index
    %c0_18 = arith.constant 0 : index
    %34 = vector.load %arg8[%c16, %c0_18] : memref<32x32xf32, #tpu.memory_space<vmem>>, vector<16x32xf32>
    %cst_19 = arith.constant dense<0.000000e+00> : vector<8x32xf32>
    %35 = tpu.matmul %33, %34, %cst_19 {dimension_numbers = #tpu.dot_dimension_numbers<[1], [0], [0], [1], [0, 0, 1, 1], [], []>} : vector<8x16xf32>, vector<16x32xf32>, vector<8x32xf32> -> vector<8x32xf32>
    %36 = arith.addf %30, %35 : vector<8x32xf32>
    %c0_20 = arith.constant 0 : index
    %c0_21 = arith.constant 0 : index
    %c0_22 = arith.constant 0 : index
    %37 = vector.load %arg9[%c0_20, %c0_21, %c0_22] : memref<1x8x32xf32, #tpu.memory_space<vmem>>, vector<1x8x32xf32>
    %38 = vector.shape_cast %37 : vector<1x8x32xf32> to vector<8x32xf32>
    %39 = vector.shape_cast %36 : vector<8x32xf32> to vector<1x8x32xf32>
    tpu.vector_store %arg9[%c0_20, %c0_21, %c0_22], %39 {strides = array<i32>} : memref<1x8x32xf32, #tpu.memory_space<vmem>>, vector<1x8x32xf32>,
    return
  }
  func.func @transform_0(%arg0: i32, %arg1: i32) -> (i32, i32, i32) {
    %c0_i32 = arith.constant 0 : i32
    %c0_i32_0 = arith.constant 0 : i32
    return %arg0, %arg1, %c0_i32 : i32, i32, i32
  }
  func.func @transform_1(%arg0: i32, %arg1: i32) -> (i32, i32, i32) {
    %c0_i32 = arith.constant 0 : i32
    %c0_i32_0 = arith.constant 0 : i32
    %c0_i32_1 = arith.constant 0 : i32
    return %arg0, %c0_i32, %c0_i32_0 : i32, i32, i32
  }
  func.func @transform_2(%arg0: i32, %arg1: i32) -> (i32, i32, i32) {
    %c0_i32 = arith.constant 0 : i32
    %c0_i32_0 = arith.constant 0 : i32
    %c0_i32_1 = arith.constant 0 : i32
    return %arg0, %c0_i32, %c0_i32_0 : i32, i32, i32
  }
  func.func @transform_3(%arg0: i32, %arg1: i32) -> (i32, i32) {
    %c0_i32 = arith.constant 0 : i32
    %c0_i32_0 = arith.constant 0 : i32
    %c0_i32_1 = arith.constant 0 : i32
    return %c0_i32, %c0_i32_0 : i32, i32
  }
  func.func @transform_4(%arg0: i32, %arg1: i32) -> (i32, i32) {
    %c0_i32 = arith.constant 0 : i32
    %c0_i32_0 = arith.constant 0 : i32
    %c0_i32_1 = arith.constant 0 : i32
    return %c0_i32, %c0_i32_0 : i32, i32
  }
  func.func @transform_5(%arg0: i32, %arg1: i32) -> (i32, i32) {
    %c0_i32 = arith.constant 0 : i32
    %c0_i32_0 = arith.constant 0 : i32
    %c0_i32_1 = arith.constant 0 : i32
    return %c0_i32, %c0_i32_0 : i32, i32
  }
  func.func @transform_6(%arg0: i32, %arg1: i32) -> (i32, i32) {
    %c0_i32 = arith.constant 0 : i32
    %c0_i32_0 = arith.constant 0 : i32
    %c0_i32_1 = arith.constant 0 : i32
    return %c0_i32, %c0_i32_0 : i32, i32
  }
  func.func @transform_7(%arg0: i32, %arg1: i32) -> (i32, i32, i32) {
    %c0_i32 = arith.constant 0 : i32
    %c0_i32_0 = arith.constant 0 : i32
    return %arg0, %arg1, %c0_i32 : i32, i32, i32
  }
}

</mosaic_0001>

<bundles_post_ra>
// kernel: tpu_custom_call.1
= control target key start
LH: loop header
LB: loop body
LE: loop exit
PB: predicated region body
PF: predicated region fallthrough
CT: control target
= control target key end

     0   :  { %s2204_s0 = inlined_call_operand.hbm [shape: f32[2,8,32], index: 0, kind: input, shape index: {}]   ;;  %s2205_s1 = inlined_call_operand.hbm [shape: f32[2,8,32], index: 1, kind: input, shape index: {}]   ;;  %s2206_s2 = inlined_call_operand.hbm [shape: f32[2,8,32], index: 2, kind: input, shape index: {}]   ;;  %s2207_s3 = inlined_call_operand.hbm [shape: f32[32,32], index: 3, kind: input, shape index: {}]   ;;  %s2208_s4 = inlined_call_operand.hbm [shape: f32[32,32], index: 4, kind: input, shape index: {}]   ;;  %s2209_s5 = inlined_call_operand.hbm [shape: f32[32,32], index: 5, kind: input, shape index: {}]   ;;  %s2210_s6 = inlined_call_operand.hbm [shape: f32[32,32], index: 6, kind: input, shape index: {}]   ;;  %s2211_s7 = inlined_call_operand.hbm [shape: f32[2,8,32], index: 7, kind: output, shape index: {}]  }
   0x1   :  { %2222 = sst [smem:[#allocation24_spill]] %s2205_s1 }
   0x2   :  { %12 = vsyncpa [#allocation5], 0 }
   0x3   :  { %14 = vsyncpa [#allocation5 + $0x1], 0 }
   0x4   :  { %15 = vsyncpa [#allocation8], 0 }
   0x5   :  { %16 = vsyncpa [#allocation11], 0 }
   0x6   :  { %17 = vsyncpa [#allocation14], 0 }
   0x7   :  { %18 = vsyncpa [#allocation6], 0 }
   0x8   :  { %20 = vsyncpa [#allocation6 + $0x1], 0  ;;  %s1869_s24 = smov 0   ;;  %s1871_s25 = smov 0  }
   0x9   :  { %s1873_s26 = smov 0   ;;  %s1875_s27 = smov 0  }
   0xa   :  { %s1877_s28 = smov 0   ;;  %s1879_s29 = smov 0  }
   0xb LB: > { %2223 = sst [smem:[#allocation22_spill]] %s1794_s24  ;;  %s1278_s30 = sadd.s32 4294967295, %s1814_s29   ;;  %s1814_s29 = sphi %s1879_s29, %s26_s29   ;;  %s1810_s28 = sphi %s1877_s28, %s2251_s28   ;;  %s1806_s27 = sphi %s1875_s27, %s2250_s27   ;;  %s1802_s26 = sphi %s1873_s26, %s2249_s26   ;;  %s1798_s25 = sphi %s1871_s25, %s2248_s25   ;;  %s1794_s24 = sphi %s1869_s24, %s2247_s24  }
   0xc   : > { %s1279_s8 = sadd.s32 4294967294, %s1814_s29   ;;  %p60_p0 = scmp.ne.s32.totalorder %s1798_s25, %s1794_s24 }
   0xd   : > { %p1901_p1 = scmp.eq.s32.totalorder %s1278_s30, 0  ;;  %p1905_p2 = scmp.eq.s32.totalorder %s1278_s30, 1 }
   0xe   : > { %p228_p3 = scmp.eq.s32.totalorder %s1279_s8, 1  ;;  %p1280_p5 = scmp.ge.s32.totalorder %s1814_s29, 1 }
   0xf   : > { %s2224_s9 = scalar_select %p1901_p1, 1, 0 }
  0x10   : > { %s2225_s10 = scalar_select %p1905_p2, 1, 0 }
  0x11   : > { %p1911_p4 = por %p1901_p1, %p60_p0  ;;  %p1916_p6 = por %p228_p3, %p60_p0 }
  0x12   : > { %p235_p7 = scmp.lt.s32.totalorder %s1814_s29, 3  ;;  %s1921_s13 = sshll.u32 %s1806_s27, 7 }
  0x13   : > { %s2226_s11 = scalar_select %p1911_p4, 1, 0 }
  0x14   : > { %s2227_s12 = scalar_select %p1916_p6, 1, 0 }
  0x15   : > { %p1923_p8 = pnand %p1280_p5, %p235_p7  ;;  %s2230_s1 = sld [smem:[#allocation24_spill]] }
  0x16   : > { %2228 = sst [smem:[#allocation23_spill]] %s2227_s12  ;;  %s1816_s18 = smov [#allocation7]  }
  0x17   : > { %s2229_s14 = scalar_select %p1923_p8, 1, 0 }
  0x18   : > { %s250_s19 = sshll.u32 %s1816_s18, 4  ;;  %p1432_p9 = pneg %p1923_p8  ;;  %s251_s19 = int_to_ptr.vmem [resolvable:$true] %s250_s19 }
  0x19   : > { %s1817_s22 = smov [#allocation10]  }
  0x1a   : > { %p1938_p11 = pnand %p1432_p9, %p1911_p4  ;;  %p1944_p12 = pnand %p1432_p9, %p1901_p1 }
  0x1b   : > { %s1931_s17 = scalar_lea.hbm %s2230_s1, %s1921_s13  ;;  %s273_s23 = sshll.u32 %s1817_s22, 4  ;;  %s274_s23 = int_to_ptr.vmem [resolvable:$true] %s273_s23 }
  0x1c   : > { %s2232_s21 = scalar_select %p1944_p12, 1, 0 }
  0x1d   : > { %s1534_s27 = scalar_lea.hbm %s1931_s17, 128  ;;  %p1536_p0 = pneg %p1938_p11 }
  0x1e   : > { %p1535_p13 = scmp.ne.s32.totalorder %s1931_s17, %s1534_s27  ;;  %s1539_s15 = scalar_lea.hbm %s2230_s1, 256 }
  0x1f   : > { %p1540_p7 = scmp.lt.s32.totalorder %s1931_s17, %s2230_s1  ;;  %p1541_p9 = scmp.lt.s32.totalorder %s1539_s15, %s1534_s27 }
  0x20   : > { %p1537_p3 = pnand %p1536_p0, %p1535_p13 }
  0x21   : > { %p1542_p10 = por %p1541_p9, %p1540_p7 }
  0x22   : > { %p1538_p5 = pneg %p1537_p3 }
  0x24   : > { %p1543_p6 = pnand %p1542_p10, %p1538_p5 }
  0x26   : > { %1546 = shalt.err (!%p1543_p6)
}
  0x27   : > { %s1547_s22 = scalar_lea.vmem %s251_s19, 128  ;;  %p1555_p3 = scmp.lt.s32.totalorder %s251_s19, %s251_s19 }
  0x28   : > { %p1548_p1 = scmp.ne.s32.totalorder %s251_s19, %s1547_s22  ;;  %p1556_p8 = scmp.lt.s32.totalorder %s1547_s22, %s1547_s22 }
  0x2a   : > { %p1550_p4 = pnand %p1548_p1, %p1536_p0  ;;  %p1557_p2 = por %p1556_p8, %p1555_p3 }
  0x2c   : > { %p1551_p13 = pneg %p1550_p4 }
  0x2e   : > { %p1558_p12 = pnand %p1557_p2, %p1551_p13 }
  0x30   : > { %1561 = shalt.err (!%p1558_p12)
}
  0x31   : > { %1435 = dma.hbm_to_vmem [thread:$0]  (!%p1938_p11), %s1931_s17, 128, %s251_s19, [#allocation8]  }
  0x32   : > { %p2233_p6 = scmp.ne.s32.totalorder %s2232_s21, 0  ;;  %s1573_s27 = scalar_lea.vmem %s274_s23, 512 }
  0x33   : > { %p1574_p5 = scmp.ne.s32.totalorder %s274_s23, %s1573_s27  ;;  %p1581_p7 = scmp.lt.s32.totalorder %s274_s23, %s274_s23 }
  0x34   : > { %p2220_p10 = pneg %p2233_p6  ;;  %p1582_p9 = scmp.lt.s32.totalorder %s1573_s27, %s1573_s27 }
  0x36   : > { %p1576_p1 = pnand %p1574_p5, %p2220_p10  ;;  %p1583_p8 = por %p1582_p9, %p1581_p7 }
  0x38   : > { %p1577_p4 = pneg %p1576_p1 }
  0x3a   : > { %p1584_p2 = pnand %p1583_p8, %p1577_p4 }
  0x3c   : > { %1587 = shalt.err (!%p1584_p2)
}
  0x3d   : > { %s1818_s30 = smov 128   ;;  %s1819_s8 = smov 8  }
  0x3e   : > { %1441 = dma.hbm_to_vmem [thread:$0]  (!%p2233_p6), %s2207_s3, 512, %s274_s23, [#allocation11], %s1818_s30, %s1818_s30, %s1819_s8  }
  0x3f   : > { %s1985_s18 = scalar_lea.hbm %s2206_s2, %s1921_s13  ;;  %s1820_s22 = smov [#allocation13]  }
  0x40   : > { %s299_s27 = sshll.u32 %s1820_s22, 4  ;;  %s1821_s1 = smov [#allocation9]   ;;  %s300_s27 = int_to_ptr.vmem [resolvable:$true] %s299_s27 }
  0x41   : > { %s263_s12 = sshll.u32 %s1821_s1, 4  ;;  %s1599_s24 = scalar_lea.vmem %s300_s27, 512  ;;  %s264_s12 = int_to_ptr.vmem [resolvable:$true] %s263_s12 }
  0x42   : > { %p1600_p12 = scmp.ne.s32.totalorder %s300_s27, %s1599_s24  ;;  %p1607_p5 = scmp.lt.s32.totalorder %s300_s27, %s300_s27 }
  0x43   : > { %p1608_p1 = scmp.lt.s32.totalorder %s1599_s24, %s1599_s24 }
  0x44   : > { %p1602_p13 = pnand %p1600_p12, %p2220_p10 }
  0x45   : > { %p1609_p4 = por %p1608_p1, %p1607_p5 }
  0x46   : > { %p1603_p3 = pneg %p1602_p13 }
  0x48   : > { %p1610_p7 = pnand %p1609_p4, %p1603_p3 }
  0x4a   : > { %1613 = shalt.err (!%p1610_p7)
}
  0x4b   : > { %1447 = dma.hbm_to_vmem [thread:$0]  (!%p2233_p6), %s2209_s5, 512, %s300_s27, [#allocation14], %s1818_s30, %s1818_s30, %s1819_s8  }
  0x4c   : > { %s1614_s1 = scalar_lea.hbm %s1985_s18, 128  ;;  %s1619_s15 = scalar_lea.hbm %s2206_s2, 256 }
  0x4d   : > { %p1615_p9 = scmp.ne.s32.totalorder %s1985_s18, %s1614_s1  ;;  %p1620_p12 = scmp.lt.s32.totalorder %s1985_s18, %s2206_s2 }
  0x4e   : > { %p1621_p13 = scmp.lt.s32.totalorder %s1619_s15, %s1614_s1 }
  0x4f   : > { %p1617_p8 = pnand %p1615_p9, %p1536_p0 }
  0x50   : > { %p1622_p3 = por %p1621_p13, %p1620_p12 }
  0x51   : > { %p1618_p2 = pneg %p1617_p8 }
  0x53   : > { %p1623_p5 = pnand %p1622_p3, %p1618_p2 }
  0x55   : > { %1626 = shalt.err (!%p1623_p5)
}
  0x56   : > { %s1627_s27 = scalar_lea.vmem %s264_s12, 128  ;;  %p1635_p9 = scmp.lt.s32.totalorder %s264_s12, %s264_s12 }
  0x57   : > { %p1628_p1 = scmp.ne.s32.totalorder %s264_s12, %s1627_s27  ;;  %p1636_p8 = scmp.lt.s32.totalorder %s1627_s27, %s1627_s27 }
  0x59   : > { %p1630_p4 = pnand %p1628_p1, %p1536_p0  ;;  %p1637_p10 = por %p1636_p8, %p1635_p9 }
  0x5b   : > { %p1631_p7 = pneg %p1630_p4 }
  0x5d   : > { %p1638_p6 = pnand %p1637_p10, %p1631_p7 }
  0x5f   : > { %1641 = shalt.err (!%p1638_p6)
}
  0x60   : > { %1438 = dma.hbm_to_vmem [thread:$0]  (!%p1938_p11), %s1985_s18, 128, %s264_s12, [#allocation8]  }
  0x61   : > { %s1822_s23 = smov [#allocation12]   ;;  %s1823_s1 = smov [#allocation15]  }
  0x62   : > { %s286_s17 = sshll.u32 %s1822_s23, 4  ;;  %s312_s24 = sshll.u32 %s1823_s1, 4  ;;  %s287_s17 = int_to_ptr.vmem [resolvable:$true] %s286_s17  ;;  %s313_s24 = int_to_ptr.vmem [resolvable:$true] %s312_s24 }
  0x63   : > { %s1653_s19 = scalar_lea.vmem %s287_s17, 512  ;;  %p2234_p12 = scmp.ne.s32.totalorder %s2232_s21, 0 }
  0x64   : > { %p1654_p2 = scmp.ne.s32.totalorder %s287_s17, %s1653_s19  ;;  %p1661_p5 = scmp.lt.s32.totalorder %s287_s17, %s287_s17 }
  0x65   : > { %p2235_p0 = pneg %p2234_p12  ;;  %p1662_p1 = scmp.lt.s32.totalorder %s1653_s19, %s1653_s19 }
  0x67   : > { %p1656_p13 = pnand %p1654_p2, %p2235_p0  ;;  %p1663_p10 = por %p1662_p1, %p1661_p5 }
  0x69   : > { %p1657_p3 = pneg %p1656_p13 }
  0x6b   : > { %p1664_p6 = pnand %p1663_p10, %p1657_p3 }
  0x6d   : > { %1667 = shalt.err (!%p1664_p6)
}
  0x6e   : > { %1444 = dma.hbm_to_vmem [thread:$0]  (!%p2234_p12), %s2208_s4, 512, %s287_s17, [#allocation11], %s1818_s30, %s1818_s30, %s1819_s8  }
  0x6f   : > { %s1679_s18 = scalar_lea.vmem %s313_s24, 512  ;;  %p2236_p4 = pmov %p2235_p0 }
  0x70   : > { %p1680_p11 = scmp.ne.s32.totalorder %s313_s24, %s1679_s18  ;;  %p1687_p8 = scmp.lt.s32.totalorder %s313_s24, %s313_s24 }
  0x71   : > { %p1688_p2 = scmp.lt.s32.totalorder %s1679_s18, %s1679_s18 }
  0x72   : > { %p1682_p7 = pnand %p1680_p11, %p2236_p4 }
  0x73   : > { %p1689_p0 = por %p1688_p2, %p1687_p8 }
  0x74   : > { %p1683_p9 = pneg %p1682_p7 }
  0x76   : > { %p1690_p13 = pnand %p1689_p0, %p1683_p9 }
  0x78   : > { %1693 = shalt.err (!%p1690_p13)
}
  0x79   : > { %1450 = dma.hbm_to_vmem [thread:$0]  (!%p2234_p12), %s2210_s6, 512, %s313_s24, [#allocation14], %s1818_s30, %s1818_s30, %s1819_s8  }
  0x7a   : > { %s47_s22 = sadd.s32 1, %s1802_s26  ;;  %s38_s21 = sadd.s32 1, %s1810_s28 }
  0x7b   : > { %p54_p3 = scmp.ne.s32.totalorder %s1802_s26, %s1798_s25  ;;  %p40_p5 = scmp.ge.s32.totalorder %s38_s21, 2 }
  0x7c   : > { %p55_p1 = scmp.eq.s32.totalorder %s1814_s29, 0  ;;  %p2237_p10 = scmp.ne.s32.totalorder %s2225_s10, 0 }
  0x7d   : > { %p1463_p11 = scmp.lt.s32.totalorder %s1814_s29, 2  ;;  %s2253_s21 = smov (%p40_p5, %s38_s21), 0 }
  0x7e   : > { %p2045_p6 = por %p2237_p10, %p54_p3  ;;  %p56_p4 = por %p55_p1, %p54_p3 }
  0x7f   : > { %s326_s23 = sand.u32 1, %s1802_s26   ;;  %s42_s17 = ssub.s32 %s1810_s28, %s2253_s21 }
  0x80   : > { %p45_p7 = scmp.eq.s32.totalorder %s42_s17, 0  ;;  %s1288_s30 = sshll.u32 %s326_s23, 3 }
  0x81   : > { %s1289_s8 = sshll.u32 %s1810_s28, 7  ;;  %s330_s12 = scalar_lea.vmem [#allocation4], %s1288_s30 }
  0x82   : > { %s2057_s1 = scalar_select %p45_p7, %s1802_s26, %s47_s22  }
  0x83   : > { %s336_s10 = scalar_lea.hbm %s2204_s0, %s1289_s8  ;;  %s338_s20 = sshll.u32 %s330_s12, 4  ;;  %s339_s20 = int_to_ptr.vmem [resolvable:$true] %s338_s20 }
  0x84   : > { %p2064_p12 = pnand %p1463_p11, %p56_p4  ;;  %s327_s15 = scalar_lea.sflag [#allocation5], %s326_s23 }
  0x85   : > { %s1707_s16 = scalar_lea.vmem %s339_s20, 128  ;;  %s1824_s22 = smov [#allocation4]  }
  0x86   : > { %p1696_p9 = pneg %p2064_p12  ;;  %p1708_p8 = scmp.ne.s32.totalorder %s339_s20, %s1707_s16 }
  0x87   : > { %s1712_s17 = sshll.u32 %s1824_s22, 4  ;;  %s1713_s17 = int_to_ptr.vmem [resolvable:$false] %s1712_s17 }
  0x88   : > { %p1710_p2 = pnand %p1708_p8, %p1696_p9  ;;  %s1714_s8 = scalar_lea.vmem %s1713_s17, 256 }
  0x89   : > { %p1715_p13 = scmp.lt.s32.totalorder %s339_s20, %s1713_s17  ;;  %p1716_p3 = scmp.lt.s32.totalorder %s1714_s8, %s1707_s16 }
  0x8a   : > { %p1711_p0 = pneg %p1710_p2 }
  0x8b   : > { %p1717_p5 = por %p1716_p3, %p1715_p13 }
  0x8d   : > { %p1718_p1 = pnand %p1717_p5, %p1711_p0 }
  0x8f   : > { %1721 = shalt.err (!%p1718_p1)
}
  0x90   : > { %1454 = dma.hbm_to_vmem [thread:$0]  (!%p2064_p12), %s336_s10, 128, %s339_s20, %s327_s15  }
  0x91   : > { %p2240_p10 = scmp.ne.s32.totalorder %s2229_s14, 0 }
  0x92   : > { %s2075_s23 = sand.u32 (!%p2240_p10), 1, %s1798_s25   ;;  %p2241_p11 = scmp.ne.s32.totalorder (!%p2240_p10), %s2226_s11, 0 }
  0x93   : > { %347 = sbr.rel (%p2240_p10) target bundleno = 1125 (0x465), region = 48  ;;  %s1291_s30 = sshll.u32 (!%p2240_p10), %s2075_s23, 3 }
  0x94   : > { %s350_s24 = scalar_lea.sflag (!%p2240_p10), [#allocation5], %s2075_s23  ;;  %s2081_s19 = scalar_lea.vmem (!%p2240_p10), [#allocation4], %s1291_s30 }
  0x98   : > { %1773 = dma.done.wait (%p2241_p11), %s350_s24, 128  }
  0x99   : > { %1775 = vsyncadd (%p2241_p11), %s350_s24, 4294967168 }
  0x9a   : > { %1777 = dma.done.wait (%p2241_p11), [#allocation8], 256  }
  0x9b   : > { %1779 = vsyncadd (%p2241_p11), [#allocation8], 4294967040  ;;  %p2242_p4 = scmp.ne.s32.totalorder %s2224_s9, 0 }
  0x9d   : > { %1781 = dma.done.wait (%p2242_p4), [#allocation11], 1024  }
  0x9e   : > { %1783 = vsyncadd (%p2242_p4), [#allocation11], 4294966272 }
  0x9f   : > { %1785 = dma.done.wait (%p2242_p4), [#allocation14], 1024  }
  0xa0   : > { %1787 = vsyncadd (%p2242_p4), [#allocation14], 4294966272  ;;  %v1825_v0 = vmov 0.0   ;;  %vm1826_vm0 = vmmov 0   ;;  %v416_v1 = vld [vmem:[#allocation12 + $0x18] sm:$0xff]  ;;  %v415_v2 = vld [vmem:[#allocation12 + $0x10] sm:$0xff]  ;;  %s2155_s20 = scalar_lea.hbm %s2211_s7, %s1921_s13 }
  0xa1   : > { %1341 = vmatprep.subr.mxu0 %v1825_v0  ;;  %1349 = vmatprep.mubr.msk.f32.mxu0 %vm1826_vm0, %v1825_v0  ;;  %v414_v3 = vld [vmem:[#allocation12 + $0x8] sm:$0xff]  ;;  %v413_v4 = vld [vmem:[#allocation12] sm:$0xff]  ;;  %v412_v5 = vld [vmem:[#allocation7] sm:$0xff]  ;;  %vm417_vm1 = vcmask 261120   ;;  %vm652_vm2 = vcmask 130048   ;;  %s1827_s9 = smov 112  }
  0xa2   : > { %1352 = vmatprep.subr.mxu1 %v1825_v0  ;;  %1360 = vmatprep.mubr.msk.f32.mxu1 %vm1826_vm0, %v1825_v0  ;;  %v575_v6 = vld [vmem:[#allocation10 + $0x18] sm:$0xff]  ;;  %v574_v7 = vld [vmem:[#allocation10 + $0x10] sm:$0xff]  ;;  %v573_v8 = vld [vmem:[#allocation10 + $0x8] sm:$0xff]  ;;  %vm819_vm3 = vcmask 64512   ;;  %s407_s11 = scalar_lea.vmem [#allocation16], %s1291_s30  ;;  %s1123_s18 = scalar_lea.sflag [#allocation6], %s2075_s23 }
  0xa3   : > { %1342 = vmatpush3.msra.mxu0 %v416_v1  ;;  %v572_v9 = vld [vmem:[#allocation10] sm:$0xff]  ;;  %v496_v11 = vld [vmem:[#allocation13 + $0x18] sm:$0xff]  ;;  %v495_v12 = vld [vmem:[#allocation13 + $0x10] sm:$0xff]  ;;  %s1137_s14 = sshll.u32 %s407_s11, 4  ;;  %s1828_s16 = smov [#allocation16]   ;;  %s2157_s14 = int_to_ptr.vmem [resolvable:$true] %s1137_s14 }
  0xa4   : > { %1343 = vmatprep.subr.mxu0 %v1825_v0  ;;  %v571_v10 = vld [vmem:[%s2081_s19] sm:$0xff]  ;;  %1353 = vmatpush3.msra.mxu1 %v496_v11  ;;  %v492_v15 = vld [vmem:[#allocation9] sm:$0xff]  ;;  %v973_v46 = vld [vmem:[#allocation15 + $0x10] sm:$0xff]  ;;  %s1722_s15 = scalar_lea.vmem %s2157_s14, 128  ;;  %s1726_s22 = sshll.u32 %s1828_s16, 4  ;;  %s1727_s22 = int_to_ptr.vmem [resolvable:$false] %s1726_s22 }
  0xa5   : > { %1344 = vmatpush3.msra.mxu0 %v415_v2  ;;  %1354 = vmatprep.subr.mxu1 %v1825_v0  ;;  %v494_v13 = vld [vmem:[#allocation13 + $0x8] sm:$0xff]  ;;  %v493_v14 = vld [vmem:[#allocation13] sm:$0xff]  ;;  %v974_v44 = vld [vmem:[#allocation15 + $0x18] sm:$0xff]  ;;  %p1723_p7 = scmp.ne.s32.totalorder %s2157_s14, %s1722_s15  ;;  %s1728_s13 = scalar_lea.vmem %s1727_s22, 256 }
  0xa6   : > { %1345 = vmatprep.subr.mxu0 %v1825_v0  ;;  %1355 = vmatpush3.msra.mxu1 %v495_v12  ;;  %v894_v45 = vld [vmem:[#allocation15 + $0x8] sm:$0xff]  ;;  %v893_v47 = vld [vmem:[#allocation15] sm:$0xff]  ;;  %p1729_p8 = scmp.lt.s32.totalorder %s2157_s14, %s1727_s22  ;;  %p1730_p2 = scmp.lt.s32.totalorder %s1728_s13, %s1722_s15 }
  0xa7   : > { %1346 = vmatpush3.msra.mxu0 %v414_v3  ;;  %1356 = vmatprep.subr.mxu1 %v1825_v0  ;;  %p1724_p12 = pnand %p1723_p7, %p2045_p6 }
  0xa8   : > { %1347 = vmatprep.subr.mxu0 %v1825_v0  ;;  %1357 = vmatpush3.msra.mxu1 %v494_v13  ;;  %p1731_p0 = por %p1730_p2, %p1729_p8 }
  0xa9   : > { %1348 = vmatpush3.msra.mxu0 %v413_v4  ;;  %1358 = vmatprep.subr.mxu1 %v1825_v0  ;;  %p1725_p9 = pneg %p1724_p12 }
  0xaa   : > { %1350 = vmatmul.mubr.msk.f32.vlgmr.msra.gmra.mxu0 %vm417_vm1, %v412_v5  ;;  %1363 = vmatprep.subr.mxu0 %v1825_v0 }
  0xab   : > { %1364 = vmatpush3.msra.mxu0 %v575_v6  ;;  %1371 = vmatprep.mubr.msk.f32.mxu0 %vm1826_vm0, %v1825_v0  ;;  %p1732_p13 = pnand %p1731_p0, %p1725_p9 }
  0xac   : > { %1365 = vmatprep.subr.mxu0 %v1825_v0  ;;  %1359 = vmatpush3.msra.mxu1 %v493_v14 }
  0xad   : > { %1366 = vmatpush3.msra.mxu0 %v574_v7  ;;  %1361 = vmatmul.mubr.msk.f32.vlgmr.msra.gmra.mxu1 %vm417_vm1, %v492_v15 }
  0xae   : > { %1367 = vmatprep.subr.mxu0 %v1825_v0  ;;  %1374 = vmatprep.subr.mxu1 %v1825_v0 }
  0xaf   : > { %1368 = vmatpush3.msra.mxu0 %v573_v8  ;;  %1376 = vmatprep.mubr.msk.f32.mxu1 %vm1826_vm0, %v1825_v0 }
  0xb0   : > { %1369 = vmatprep.subr.mxu0 %v1825_v0 }
  0xb1   : > { %1370 = vmatpush3.msra.mxu0 %v572_v9 }
  0xb2   : > { %1372 = vmatmul.mubr.msk.f32.vlgmr.msra.gmra.mxu0 %vm417_vm1, %v571_v10  ;;  %1384 = vmatprep.subr.mxu0 %v1825_v0 }
  0xb3   : > { %1386 = vmatprep.mubr.msk.f32.mxu0 %vm1826_vm0, %v1825_v0 }
 0x16a   : > { %v487_v16 = vpop.f32.mrf.mxu0 }
 0x16b   : > { %491 = vst.msk [vmem:[#allocation2] sm:$0xff] %vm417_vm1, %v487_v16 }
 0x16c   : > { %v1351_v17 = vpop.f32.mrf.mxu0 }
 0x16d   : > { %v566_v21 = vpop.f32.mrf.mxu1 }
 0x16e   : > { %570 = vst.msk [vmem:[#allocation3] sm:$0xff] %vm417_vm1, %v566_v21 }
 0x16f   : > { %v1362_v22 = vpop.f32.mrf.mxu1 }
 0x172   : > { %v650_v18 = vld [vmem:[#allocation2] sm:$0xff]  ;;  %v646_v19 = vpop.f32.mrf.mxu0 }
 0x173   : > { %732 = vrot.lane.b32.xlu0 %v650_v18, %s1827_s9  ;;  %1375 = vmatpush3.xpose.msk.msra.mxu1 %vm652_vm2, %v650_v18 }
 0x174   : > { %v1373_v20 = vpop.f32.mrf.mxu0  ;;  %1379 = vmatprep.subr.mxu1 %v1825_v0 }
 0x175   : > { %v651_v23 = vld [vmem:[#allocation3] sm:$0xff] }
 0x176   : > { %1377 = vmatmul.mubr.msk.f32.vlgmr.msra.gmra.mxu1 %vm652_vm2, %v646_v19  ;;  %897 = vrot.lane.b32.xlu1 %v651_v23, %s1827_s9 }
 0x177   : > { %730 = vrot.lane.b32.xlu0 %v646_v19, %s1827_s9  ;;  %1381 = vmatprep.mubr.msk.f32.mxu1 %vm1826_vm0, %v1825_v0 }
 0x178   : > { %1385 = vmatpush3.msra.mxu0 %v651_v23 }
 0x179   : > { %1394 = vmatprep.subr.mxu0 %v1825_v0 }
 0x1e5   : > { %v733_v24 = vpop.permute.xlu0 %732 }
 0x1e6   : > { %1380 = vmatpush3.xpose.msk.msra.mxu1 %vm652_vm2, %v733_v24 }
 0x1e7   : > { %1389 = vmatprep.subr.mxu1 %v1825_v0 }
 0x1e8   : > { %v898_v28 = vpop.permute.xlu1 %897 }
 0x1e9   : > { %v731_v25 = vpop.permute.xlu0 %730 }
 0x1ea   : > { %1382 = vmatmul.mubr.msk.f32.vlgmr.msra.gmra.mxu1 %vm652_vm2, %v731_v25 }
 0x1eb   : > { %1391 = vmatprep.mubr.msk.f32.mxu1 %vm1826_vm0, %v1825_v0  ;;  %1390 = vmatpush3.msra.mxu1 %v898_v28 }
 0x1ec   : > { %1401 = vmatprep.subr.mxu1 %v1825_v0 }
 0x236   : > { %v725_v26 = vpop.f32.mrf.mxu1 }
 0x237   : > { %v729_v30 = vmul.f32 0.25, %v725_v26 }
 0x238   : > { %v1378_v27 = vpop.f32.mrf.mxu1 }
 0x2aa   : > { %v804_v29 = vpop.f32.mrf.mxu1 }
 0x2ab   : > { %v808_v31 = vmul.f32 0.25, %v804_v29 }
 0x2ac   : > { %v1383_v32 = vpop.f32.mrf.mxu1 }
 0x2ad   : > { %v809_v33 = vmax.f32 %v729_v30, %v808_v31 }
 0x2af   : > { %v810_v34 = vsub.f32 %v729_v30, %v809_v33  ;;  %v813_v35 = vsub.f32 %v808_v31, %v809_v33 }
 0x2b1   : > { %v811_v36 = vmul.f32 1.442695, %v810_v34  ;;  %v814_v37 = vmul.f32 1.442695, %v813_v35 }
 0x2b3   : > { %1528 = vpow2.f32 %v811_v36 }
 0x2b4   : > { %1530 = vpow2.f32 %v814_v37 }
 0x2c0   : > { %v1529_v38 = vpop.eup %1528 }
 0x2c1   : > { %v1531_v39 = vpop.eup %1530 }
 0x2c2   : > { %v816_v40 = vadd.f32 %v1531_v39, %v1529_v38 }
 0x2c4   : > { %1532 = vrcp.f32 %v816_v40 }
 0x2d1   : > { %v1533_v41 = vpop.eup %1532 }
 0x2d2   : > { %v818_v42 = vmul.f32 %v1533_v41, %v1529_v38  ;;  %v895_v43 = vmul.f32 %v1533_v41, %v1531_v39 }
 0x2d4   : > { %1387 = vmatmul.mubr.msk.f32.vlgmr.msra.gmra.mxu0 %vm819_vm3, %v818_v42  ;;  %1392 = vmatmul.mubr.msk.f32.vlgmr.msra.gmra.mxu1 %vm819_vm3, %v895_v43 }
 0x2d5   : > { %1395 = vmatpush3.msra.mxu0 %v974_v44  ;;  %1402 = vmatpush3.msra.mxu1 %v894_v45 }
 0x2d6   : > { %1396 = vmatprep.subr.mxu0 %v1825_v0  ;;  %1403 = vmatprep.subr.mxu1 %v1825_v0 }
 0x2d7   : > { %1397 = vmatpush3.msra.mxu0 %v973_v46  ;;  %1404 = vmatpush3.msra.mxu1 %v893_v47 }
 0x2d8   : > { %1398 = vmatprep.mubr.msk.f32.mxu0 %vm1826_vm0, %v1825_v0  ;;  %1405 = vmatprep.mubr.msk.f32.mxu1 %vm1826_vm0, %v1825_v0 }
 0x394   : > { %v889_v48 = vpop.f32.mrf.mxu0  ;;  %v969_v49 = vpop.f32.mrf.mxu1 }
 0x395   : > { %1399 = vmatmul.mubr.msk.f32.vlgmr.msra.gmra.mxu0 %vm652_vm2, %v969_v49  ;;  %1406 = vmatmul.mubr.msk.f32.vlgmr.msra.gmra.mxu1 %vm652_vm2, %v889_v48 }
 0x396   : > { %v1388_v50 = vpop.f32.mrf.mxu0  ;;  %v1393_v51 = vpop.f32.mrf.mxu1 }
 0x455   : > { %v1044_v52 = vpop.f32.mrf.mxu0  ;;  %v1117_v53 = vpop.f32.mrf.mxu1 }
 0x456   : > { %v1118_v54 = vadd.f32 %v1117_v53, %v1044_v52 }
 0x457   : > { %v1400_v55 = vpop.f32.mrf.mxu0  ;;  %v1407_v56 = vpop.f32.mrf.mxu1 }
 0x458   : > { %1121 = vst.msk [vmem:[%s407_s11] sm:$0xff] %vm417_vm1, %v1118_v54 }
 0x459   : > { %1735 = shalt.err (!%p1732_p13)
}
 0x45a   : > { %s1736_s17 = scalar_lea.hbm %s2155_s20, 128  ;;  %s1740_s30 = scalar_lea.hbm %s2211_s7, 256 }
 0x45b   : > { %p1737_p3 = scmp.ne.s32.totalorder %s2155_s20, %s1736_s17  ;;  %p1741_p10 = scmp.lt.s32.totalorder %s2155_s20, %s2211_s7 }
 0x45c   : > { %p1742_p11 = scmp.lt.s32.totalorder %s1740_s30, %s1736_s17 }
 0x45d   : > { %p1738_p5 = pnand %p1737_p3, %p2045_p6 }
 0x45e   : > { %p1743_p4 = por %p1742_p11, %p1741_p10 }
 0x45f   : > { %p1739_p1 = pneg %p1738_p5 }
 0x461   : > { %p1744_p7 = pnand %p1743_p4, %p1739_p1 }
 0x463   : > { %1747 = shalt.err (!%p1744_p7)
}
 0x464   : > { %1430 = dma.vmem_to_hbm [thread:$0]  (%p2045_p6), %s2157_s14, 128, %s2155_s20, %s1123_s18  }
 0x465 PF: > { %s2243_s9 = sld [smem:[#allocation22_spill]]  ;;  %p2246_p9 = scmp.ge.s32.totalorder %s1814_s29, 2 }
 0x466   : > { %s2244_s11 = sld [smem:[#allocation23_spill]] }
 0x46b   : > { %s1149_s10 = sand.u32 1, %s2243_s9  }
 0x46c   : > { %p2245_p12 = scmp.ne.s32.totalorder %s2244_s11, 0  ;;  %s1150_s12 = scalar_lea.sflag [#allocation6], %s1149_s10 }
 0x46e   : > { %p1456_p8 = pnand %p2246_p9, %p2245_p12 }
 0x470   : > { %p1457_p2 = pneg %p1456_p8 }
 0x472   : > { %1789 = dma.done.wait (%p1457_p2), %s1150_s12, 128  }
 0x473   : > { %1791 = vsyncadd (%p1457_p2), %s1150_s12, 4294967168  ;;  %s26_s29 = sadd.s32 1, %s1814_s29   ;;  %s2247_s24 = smov %s1798_s25 }
 0x474   : > { %p23_p0 = scmp.ge.s32.totalorder %s26_s29, 4   ;;  %s2248_s25 = smov %s1802_s26 }
 0x475   : > { %s2249_s26 = smov %s2057_s1  ;;  %s2250_s27 = smov %s1810_s28 }
 0x476   : > { %s2251_s28 = smov %s2253_s21  ;;  %25 = sbr.rel (!%p23_p0) target bundleno = 11 (0xb), region = 123 }
 0x47b   :  { %1155 = vsyncpa [#allocation5], 1 }
 0x47c   :  { %1157 = vsyncpa [#allocation5 + $0x1], 1 }
 0x47d   :  { %1158 = vsyncpa [#allocation8], 1 }
 0x47e   :  { %1159 = vsyncpa [#allocation11], 1 }
 0x47f   :  { %1160 = vsyncpa [#allocation14], 1 }
 0x480   :  { %1161 = vsyncpa [#allocation6], 1 }
 0x481   :  { %1163 = vsyncpa [#allocation6 + $0x1], 1 }

</bundles_post_ra>
